<compile_context>
chip_gen: v5e
topology: v5e:2x2
jax: 0.10.0
libtpu: 0.0.40
codegen_flags: <defaults>
</compile_context>

<pallas_src>
import functools
import math

import jax
import jax.numpy as jnp
from jax import lax
from jax.experimental import pallas as pl
from jax.experimental.pallas import tpu as pltpu


def _label_smoothing_kernel(x_ref, tgt_ref, partial_ref, *,
                            confidence, smooth_val, n_rows, n_cols,
                            mask_rows, mask_cols):
    """Accumulates -sum(true_dist * x) for one (row-tile, col-tile) block.

    true_dist only takes two values, so the per-block contribution is a single
    weighted reduction; the constant sum(y*log y) term of the KL divergence is
    folded into a trace-time scalar in the wrapper.
    """
    i = pl.program_id(0)
    j = pl.program_id(1)

    @pl.when(j == 0)
    def _():
        partial_ref[0, 0] = jnp.float32(0.0)

    tn, tm = x_ref.shape
    # (1, tm) column ids — tiny temp, broadcasts against the (tn, 1) labels.
    col_ids = j * tm + lax.broadcasted_iota(jnp.int32, (1, tm), 1)
    w = jnp.where(col_ids == tgt_ref[...],
                  jnp.float32(confidence), jnp.float32(smooth_val))  # (tn, tm)

    # Single fused reduction; the (bf16->f32) upcast stays inside the product.
    contrib = w * x_ref[...].astype(jnp.float32)

    # Ragged-edge masking: select AFTER the multiply so garbage (possibly
    # NaN/Inf) values in the partially-filled last block never reach the sum.
    if mask_rows or mask_cols:
        valid = None
        if mask_rows:
            row_ids = i * tn + lax.broadcasted_iota(jnp.int32, (tn, 1), 0)
            valid = row_ids < n_rows
        if mask_cols:
            cvalid = col_ids < n_cols
            valid = cvalid if valid is None else (valid & cvalid)
        contrib = jnp.where(valid, contrib, jnp.float32(0.0))

    partial_ref[0, 0] += -jnp.sum(contrib)


def _device_budgets():
    """(x-block byte budget, scoped-VMEM limit) for the local TPU generation."""
    try:
        kind = jax.devices()[0].device_kind.lower()
    except Exception:  # pragma: no cover - defensive
        kind = ""
    if "v6" in kind or "trillium" in kind:
        # 128 MiB physical VMEM, ~1.4 TB/s HBM: big blocks amortize step cost.
        return 8 * 1024 * 1024, 64 * 1024 * 1024
    # v5e (16 MiB scoped default) and v7x (64 MiB physical): moderate blocks.
    return 4 * 1024 * 1024, 32 * 1024 * 1024


def label_smoothing_forward(x, target, *, size, smoothing=0.0,
                            return_true_dist=False, tile_n=None, tile_m=None,
                            block_bytes=None):
    """Returns loss (scalar) and optionally true_dist, matching the module."""
    assert size >= 2
    n, m = x.shape
    assert m == size
    x_dtype = x.dtype
    itemsize = jnp.dtype(x_dtype).itemsize

    confidence = 1.0 - float(smoothing)
    smooth_val = float(smoothing) / (size - 1)

    # Constant-folded sum(y * log y) with xlogy guards (y == 0 contributes 0).
    c_term = confidence * math.log(confidence) if confidence > 0.0 else 0.0
    s_term = ((size - 1) * smooth_val * math.log(smooth_val)
              if smooth_val > 0.0 else 0.0)
    ylogy_const = float(n) * (c_term + s_term)

    budget, vmem_limit = _device_budgets()
    if block_bytes is not None:
        budget = int(block_bytes)

    # Sublane packing: 8 rows for f32, 16 for bf16, 32 for int8/fp8.
    pack = max(8, 32 // itemsize)

    # ---- column tile (lane axis): full vocab if it fits, else 128-multiples.
    if tile_m is None:
        if size * pack * itemsize <= budget:
            tile_m = size
        else:
            tile_m = max(128, (budget // (pack * itemsize * 128)) * 128)
    tile_m = int(tile_m)
    if tile_m >= size:
        tile_m = size                      # full dim -> no 128-divisibility need
    else:
        tile_m = max(128, (tile_m // 128) * 128)

    # ---- row tile (sublane axis): biggest pack-multiple under the budget.
    auto_tile_n = tile_n is None
    if auto_tile_n:
        rows_fit = budget // max(1, tile_m * itemsize)
        tile_n = max(pack, (min(rows_fit, max(n, 1)) // pack) * pack)
        # Keep >= 2 row tiles when possible so both v7x TensorCores get work.
        if n > pack:
            tile_n = min(tile_n, max(pack, ((n - 1) // pack) * pack))
    tile_n = max(pack, (int(tile_n) // pack) * pack)

    num_row_tiles = int(pl.cdiv(n, tile_n))
    num_col_tiles = int(pl.cdiv(size, tile_m))

    tgt2d = target.astype(jnp.int32).reshape(n, 1)

    kernel = functools.partial(
        _label_smoothing_kernel,
        confidence=confidence, smooth_val=smooth_val,
        n_rows=n, n_cols=size,
        mask_rows=(n % tile_n != 0), mask_cols=(size % tile_m != 0))

    partials = pl.pallas_call(
        kernel,
        out_shape=jax.ShapeDtypeStruct((num_row_tiles, 1), jnp.float32),
        grid=(num_row_tiles, num_col_tiles),
        in_specs=[
            pl.BlockSpec((tile_n, tile_m), lambda i, j: (i, j)),   # x tile
            pl.BlockSpec((tile_n, 1), lambda i, j: (i, 0)),        # labels
        ],
        out_specs=pl.BlockSpec((1, 1), lambda i, j: (i, 0),
                               memory_space=pltpu.MemorySpace.SMEM),
        compiler_params=pltpu.CompilerParams(
            dimension_semantics=("parallel", "arbitrary"),
            vmem_limit_bytes=vmem_limit),
    )(x, tgt2d)

    loss = jnp.sum(partials) + jnp.float32(ylogy_const)

    if return_true_dist:
        # Reconstructed in plain JAX — never written by the kernel (HBM saver).
        cols = jnp.arange(size, dtype=jnp.int32)[None, :]
        true_dist = jnp.where(cols == target.astype(jnp.int32)[:, None],
                              jnp.float32(confidence),
                              jnp.float32(smooth_val)).astype(x_dtype)
        return loss, true_dist
    return loss


def _reference(x, target, size, smoothing):
    """Plain-JAX reference of the PyTorch forward (for sanity check)."""
    confidence = 1.0 - smoothing
    smooth_val = smoothing / (size - 1)
    true_dist = jnp.full(x.shape, smooth_val, dtype=jnp.float32)
    true_dist = true_dist.at[jnp.arange(x.shape[0]), target].set(confidence)
    safe = jnp.where(true_dist > 0, true_dist, 1.0)
    term = jnp.where(true_dist > 0, true_dist * (jnp.log(safe) - x), 0.0)
    return jnp.sum(term), true_dist


if __name__ == "__main__":
    key = jax.random.PRNGKey(0)
    kx, kt, kx2, kt2, kx3, kt3 = jax.random.split(key, 6)

    N, SIZE, SMOOTHING = 8, 32, 0.1

    # --- basic f32 run (single tile), also checks true_dist reconstruction ---
    logits = jax.random.normal(kx, (N, SIZE), dtype=jnp.float32)
    x = jax.nn.log_softmax(logits, axis=-1)
    target = jax.random.randint(kt, (N,), 0, SIZE, dtype=jnp.int32)

    loss, true_dist = label_smoothing_forward(
        x, target, size=SIZE, smoothing=SMOOTHING, return_true_dist=True)
    loss = jax.block_until_ready(loss)
    true_dist = jax.block_until_ready(true_dist)

    ref_loss, ref_dist = _reference(x, target, SIZE, SMOOTHING)
    assert jnp.allclose(loss, ref_loss, rtol=1e-5, atol=1e-5)
    assert jnp.allclose(true_dist, ref_dist, rtol=1e-6, atol=1e-6)

    # --- multi row tile + ragged last tile (no wrapper pad; in-kernel mask) ---
    N2 = 20
    logits2 = jax.random.normal(kx2, (N2, SIZE), dtype=jnp.float32)
    x2 = jax.nn.log_softmax(logits2, axis=-1)
    target2 = jax.random.randint(kt2, (N2,), 0, SIZE, dtype=jnp.int32)
    loss2 = jax.block_until_ready(
        label_smoothing_forward(x2, target2, size=SIZE, smoothing=SMOOTHING,
                                tile_n=8))
    ref2, _ = _reference(x2, target2, SIZE, SMOOTHING)
    assert jnp.allclose(loss2, ref2, rtol=1e-5, atol=1e-4)

    # --- bf16 ingest (16-row sublane pack; block larger than 8-row array) ---
    x_bf16 = x.astype(jnp.bfloat16)
    loss_bf = jax.block_until_ready(
        label_smoothing_forward(x_bf16, target, size=SIZE, smoothing=SMOOTHING))
    ref_bf, _ = _reference(x_bf16.astype(jnp.float32), target, SIZE, SMOOTHING)
    assert jnp.allclose(loss_bf, ref_bf, rtol=1e-4, atol=1e-4)

    # --- smoothing == 0 edge case (xlogy guard / one-hot target) ---
    loss0 = jax.block_until_ready(
        label_smoothing_forward(x, target, size=SIZE, smoothing=0.0))
    ref0, _ = _reference(x, target, SIZE, 0.0)
    assert jnp.allclose(loss0, ref0, rtol=1e-5, atol=1e-5)

    # --- column-tiling path (wide vocab), ragged last column tile ---
    N3, SIZE3 = 16, 300
    logits3 = jax.random.normal(kx3, (N3, SIZE3), dtype=jnp.float32)
    x3 = jax.nn.log_softmax(logits3, axis=-1)
    target3 = jax.random.randint(kt3, (N3,), 0, SIZE3, dtype=jnp.int32)
    loss3 = jax.block_until_ready(
        label_smoothing_forward(x3, target3, size=SIZE3, smoothing=SMOOTHING,
                                tile_n=8, tile_m=128))
    ref3, _ = _reference(x3, target3, SIZE3, SMOOTHING)
    assert jnp.allclose(loss3, ref3, rtol=1e-5, atol=1e-4)

    print("KERNEL_OK")
</pallas_src>

<mosaic_0001>
module attributes {stable_mosaic.version = 11 : i64} {
  func.func @_label_smoothing_kernel(%arg0: i32, %arg1: i32, %arg2: memref<8x32xf32, #tpu.memory_space<vmem>>, %arg3: memref<8x1xi32, #tpu.memory_space<vmem>>, %arg4: memref<1x1xf32, #tpu.memory_space<smem>>) attributes {dimension_semantics = [#tpu.dimension_semantics<parallel>, #tpu.dimension_semantics<arbitrary>], iteration_bounds = array<i64: 1, 1>, scalar_prefetch = 0 : i64, scratch_operands = 0 : i64, tpu.core_type = #tpu.core_type<tc>, window_params = [{transform_indices = @transform_0, window_bounds = array<i64: 8, 32>}, {transform_indices = @transform_1, window_bounds = array<i64: 8, 1>}, {transform_indices = @transform_2, window_bounds = array<i64: 1, 1>}]} {
    %c0_i32 = arith.constant 0 : i32
    %0 = arith.cmpi eq, %arg1, %c0_i32 : i32
    %1 = arith.extui %0 : i1 to i32
    %c0_i32_0 = arith.constant 0 : i32
    %2 = arith.cmpi ne, %1, %c0_i32_0 : i32
    scf.if %2 {
      %cst_11 = arith.constant 0.000000e+00 : f32
      %c0_12 = arith.constant 0 : index
      %c0_13 = arith.constant 0 : index
      %24 = memref.load %arg4[%c0_12, %c0_13] : memref<1x1xf32, #tpu.memory_space<smem>>
      memref.store %cst_11, %arg4[%c0_12, %c0_13] : memref<1x1xf32, #tpu.memory_space<smem>>
    } else {
    }
    %c32_i32 = arith.constant 32 : i32
    %3 = arith.muli %arg1, %c32_i32 : i32
    %4 = tpu.iota {dimensions = array<i32: 1>} : vector<1x32xi32>
    %5 = vector.broadcast %3 : i32 to vector<1x32xi32>
    %6 = arith.addi %5, %4 : vector<1x32xi32>
    %c0 = arith.constant 0 : index
    %c0_1 = arith.constant 0 : index
    %7 = vector.load %arg3[%c0, %c0_1] : memref<8x1xi32, #tpu.memory_space<vmem>>, vector<8x1xi32>
    %8 = vector.broadcast %6 : vector<1x32xi32> to vector<8x32xi32>
    %9 = vector.broadcast %7 : vector<8x1xi32> to vector<8x32xi32>
    %10 = arith.cmpi eq, %8, %9 : vector<8x32xi32>
    %cst = arith.constant 0.899999976 : f32
    %cst_2 = arith.constant 0.0032258064 : f32
    %11 = vector.broadcast %cst : f32 to vector<8x32xf32>
    %12 = vector.broadcast %cst_2 : f32 to vector<8x32xf32>
    %13 = arith.select %10, %11, %12 : vector<8x32xi1>, vector<8x32xf32>
    %c0_3 = arith.constant 0 : index
    %c0_4 = arith.constant 0 : index
    %14 = vector.load %arg2[%c0_3, %c0_4] : memref<8x32xf32, #tpu.memory_space<vmem>>, vector<8x32xf32>
    %15 = arith.mulf %13, %14 : vector<8x32xf32>
    %c0_5 = arith.constant 0 : index
    %c0_6 = arith.constant 0 : index
    %16 = memref.load %arg4[%c0_5, %c0_6] : memref<1x1xf32, #tpu.memory_space<smem>>
    %17 = vector.shape_cast %15 : vector<8x32xf32> to vector<1x8x32xf32>
    %cst_7 = arith.constant dense<0.000000e+00> : vector<1xf32>
    %18 = vector.multi_reduction <add>, %17, %cst_7 [1, 2] : vector<1x8x32xf32> to vector<1xf32>
    %19 = vector.shape_cast %18 : vector<1xf32> to vector<1x1x1xf32>
    %20 = vector.extract %19[0, 0, 0] : f32 from vector<1x1x1xf32>
    %cst_8 = arith.constant 0.000000e+00 : f32
    %21 = arith.subf %cst_8, %20 : f32
    %22 = arith.addf %16, %21 : f32
    %c0_9 = arith.constant 0 : index
    %c0_10 = arith.constant 0 : index
    %23 = memref.load %arg4[%c0_9, %c0_10] : memref<1x1xf32, #tpu.memory_space<smem>>
    memref.store %22, %arg4[%c0_9, %c0_10] : memref<1x1xf32, #tpu.memory_space<smem>>
    return
  }
  func.func @transform_0(%arg0: i32, %arg1: i32) -> (i32, i32) {
    %c0_i32 = arith.constant 0 : i32
    return %arg0, %arg1 : i32, i32
  }
  func.func @transform_1(%arg0: i32, %arg1: i32) -> (i32, i32) {
    %c0_i32 = arith.constant 0 : i32
    %c0_i32_0 = arith.constant 0 : i32
    return %arg0, %c0_i32 : i32, i32
  }
  func.func @transform_2(%arg0: i32, %arg1: i32) -> (i32, i32) {
    %c0_i32 = arith.constant 0 : i32
    %c0_i32_0 = arith.constant 0 : i32
    return %arg0, %c0_i32 : i32, i32
  }
}

</mosaic_0001>

<bundles_post_ra>
// kernel: tpu_custom_call.1
= control target key start
LH: loop header
LB: loop body
LE: loop exit
PB: predicated region body
PF: predicated region fallthrough
CT: control target
= control target key end

     0   :  { %s110_s0 = inlined_call_operand.vmem [shape: f32[8,32], index: 0, kind: input, shape index: {}]   ;;  %s111_s1 = inlined_call_operand.vmem [shape: s32[8,1], index: 1, kind: input, shape index: {}]   ;;  %s112_s2 = inlined_call_operand.hbm [shape: f32[1,1], index: 2, kind: output, shape index: {}]  }
   0x1   :  { %v23_v0 = vld [vmem:[%s111_s1] sm:$0xff] }
   0x2   :  { %7 = vsyncpa [#allocation3], 0  ;;  %v83_v1 = vmov 0   ;;  %v19_v2 = vlaneseq  ;;  %v29_v5 = vld [vmem:[%s110_s0] sm:$0xff]  ;;  %v84_v6 = vmov 0.0032258064  }
   0x3   :  { %68 = vset.pattern.permute.xlu0 %v83_v1  ;;  %vm32_vm1 = vcmask 261120   ;;  %s52_s14 = sshll.u32 %s112_s2, 4  ;;  %s85_s16 = smov [#allocation2]   ;;  %s53_s14 = int_to_ptr.hbm [resolvable:$true] %s52_s14 }
   0x4   :  { %25 = vperm.xlu0 %68, %v23_v0   ;;  %v20_v3 = vand.u32 127, %v19_v2 }
  0x76   :  { %v26_v4 = vpop.permute.xlu0 %25 }
  0x77   :  { %vm27_vm0 = vcmp.eq.s32.totalorder %v20_v3, %v26_v4 }
  0x78   :  { %v28_v7 = vsel %vm27_vm0, 0.9, %v84_v6 }
  0x79   :  { %v30_v8 = vmul.f32 %v29_v5, %v28_v7 }
  0x7b   :  { %v33_v9 = vsel %vm32_vm1, %v30_v8, 0.0 }
  0x7c   :  { %34 = vadd.xlane.f32.xlu0 %v33_v9 }
  0xef   :  { %v35_v10 = vpop.xlane.xlu0 %34 }
  0xf0   :  { %v36_v11 = vrot.slane %v35_v10, 4 }
  0xf2   :  { %v37_v12 = vadd.f32 %v36_v11, %v35_v10 }
  0xf4   :  { %v38_v13 = vrot.slane %v37_v12, 2 }
  0xf6   :  { %v39_v14 = vadd.f32 %v38_v13, %v37_v12 }
  0xf8   :  { %v40_v15 = vrot.slane %v39_v14, 1 }
  0xfa   :  { %v41_v16 = vadd.f32 %v40_v15, %v39_v14 }
  0xfc   :  { %62 = vpush %v41_v16 }
 0x12d   :  { %s63_s0 = spop %62 }
 0x12e   :  { %s43_s15 = ssub.f32 0.0, %s63_s0 }
 0x130   :  { %46 = sst [smem:[#allocation2]] %s43_s15 }
 0x131   :  { %55 = dma.smem_to_hbm %s85_s16, 16, %s53_s14, [#allocation3]  }
 0x132   :  { %81 = dma.done.wait [#allocation3], 16  }
 0x133   :  { %82 = vsyncadd [#allocation3], 4294967280 }
 0x134   :  { %60 = sfence }
 0x135   :  { %61 = vsyncpa [#allocation3], 1 }

</bundles_post_ra>
